<compile_context>
chip_gen: v7x
topology: tpu7x:2x2x1
jax: 0.10.0
libtpu: 0.0.40
codegen_flags: <defaults>
</compile_context>

<pallas_src>
import functools

import jax
import jax.numpy as jnp
from jax.experimental import pallas as pl
from jax.experimental.pallas import tpu as pltpu

VAR_EPS = 1e-4


def _round_up(x: int, m: int) -> int:
    return (x + m - 1) // m * m


def _linear_encoder_kernel(x_ref, w_ref, b_ref, eps_ref,
                           qm_ref, qv_ref, z_ref, *, var_eps):
    # One fused matmul for both heads: y = x @ [Wm | Wv] + [bm | bv]
    # x/W are bf16 (or f32), accumulation is f32 on the MXU.
    y = jnp.dot(x_ref[...], w_ref[...],
                preferred_element_type=jnp.float32) + b_ref[...]

    n = qm_ref.shape[-1]                 # lane-padded head width (multiple of 128)
    q_m = y[:, :n]                       # mean head   (128-aligned column split)
    q_v = jnp.exp(y[:, n:]) + var_eps    # var head

    latent = jax.nn.sigmoid(q_m + jnp.sqrt(q_v) * eps_ref[...])

    qm_ref[...] = q_m
    qv_ref[...] = q_v
    z_ref[...] = latent


def linear_encoder(x, w_mean, b_mean, w_var, b_var, eps, *,
                   var_eps: float = VAR_EPS, matmul_dtype=jnp.bfloat16):
    """x: (B, n_input); w_*: (n_input, n_output); b_*: (1, n_output) or (n_output,);
    eps: (B, n_output) standard-normal noise. Returns (q_m, q_v, latent), each (B, n_output) f32."""
    B, n_in = x.shape
    n_out = w_mean.shape[1]

    n_out_p = _round_up(n_out, 128)          # lane-dense output width
    N2 = 2 * n_out_p                         # fused [mean | var] width

    # Fuse + zero-pad the two heads into one weight / one bias.
    w_f = (jnp.zeros((n_in, N2), jnp.float32)
           .at[:, :n_out].set(w_mean)
           .at[:, n_out_p:n_out_p + n_out].set(w_var)
           .astype(matmul_dtype))
    b_f = (jnp.zeros((1, N2), jnp.float32)
           .at[:, :n_out].set(jnp.reshape(b_mean, (1, n_out)))
           .at[:, n_out_p:n_out_p + n_out].set(jnp.reshape(b_var, (1, n_out))))

    # Batch tiling: multiple of 8 sublanes; cap keeps double-buffered per-step
    # footprint well under v7x's 64 MiB VMEM even for large n_in.
    TB = min(_round_up(B, 8), 512)
    B_p = _round_up(B, TB)
    x_p = jnp.zeros((B_p, n_in), matmul_dtype).at[:B].set(x.astype(matmul_dtype))
    eps_p = jnp.zeros((B_p, n_out_p), jnp.float32).at[:B, :n_out].set(eps)

    grid = (B_p // TB,)

    def batch_spec(width):                   # streamed / pipelined per batch tile
        return pl.BlockSpec((TB, width), lambda i: (i, 0))

    def resident_spec(shape):                # weights / bias stay in VMEM
        return pl.BlockSpec(shape, lambda i: (0, 0))

    itemsize = jnp.dtype(matmul_dtype).itemsize
    cost = pl.CostEstimate(
        flops=2 * B_p * n_in * N2,
        transcendentals=2 * B_p * n_out_p,                   # exp + sigmoid
        bytes_accessed=(x_p.size * itemsize + w_f.size * itemsize
                        + b_f.size * 4 + eps_p.size * 4
                        + 3 * B_p * n_out_p * 4),
    )

    q_m, q_v, latent = pl.pallas_call(
        functools.partial(_linear_encoder_kernel, var_eps=var_eps),
        out_shape=(
            jax.ShapeDtypeStruct((B_p, n_out_p), jnp.float32),   # q_m
            jax.ShapeDtypeStruct((B_p, n_out_p), jnp.float32),   # q_v
            jax.ShapeDtypeStruct((B_p, n_out_p), jnp.float32),   # latent
        ),
        grid=grid,
        in_specs=[
            batch_spec(n_in),              # x tile
            resident_spec((n_in, N2)),     # fused weights (resident)
            resident_spec((1, N2)),        # fused bias    (resident)
            batch_spec(n_out_p),           # eps tile
        ],
        out_specs=(
            batch_spec(n_out_p),
            batch_spec(n_out_p),
            batch_spec(n_out_p),
        ),
        compiler_params=pltpu.CompilerParams(
            dimension_semantics=("parallel",)),   # shard batch tiles across v7x's 2 TCs
        cost_estimate=cost,
    )(x_p, w_f, b_f, eps_p)

    # Strip batch / lane padding before returning to the caller.
    return q_m[:B, :n_out], q_v[:B, :n_out], latent[:B, :n_out]


if __name__ == "__main__":
    # Small shapes consistent with the module: batch=8, n_input=16, n_output=32
    B, n_input, n_output = 8, 16, 32

    key = jax.random.PRNGKey(0)
    kx, kwm, kwv, kbv, keps = jax.random.split(key, 5)

    # Deterministic parameter init mimicking nn.Linear + init_positive=True:
    #   mean.weight = |U(-bound, bound)|, mean.bias = 0
    #   var.weight, var.bias ~ U(-bound, bound)
    bound = 1.0 / jnp.sqrt(jnp.float32(n_input))
    w_mean = jnp.abs(jax.random.uniform(kwm, (n_input, n_output),
                                        minval=-bound, maxval=bound,
                                        dtype=jnp.float32))
    b_mean = jnp.zeros((1, n_output), dtype=jnp.float32)
    w_var = jax.random.uniform(kwv, (n_input, n_output),
                               minval=-bound, maxval=bound, dtype=jnp.float32)
    b_var = jax.random.uniform(kbv, (1, n_output),
                               minval=-bound, maxval=bound, dtype=jnp.float32)

    x = jax.random.normal(kx, (B, n_input), dtype=jnp.float32)
    # rsample noise (deterministic stand-in for torch's Normal.rsample eps)
    eps = jax.random.normal(keps, (B, n_output), dtype=jnp.float32)

    q_m, q_v, latent = linear_encoder(x, w_mean, b_mean, w_var, b_var, eps)
    jax.block_until_ready((q_m, q_v, latent))

    # Reference with the same matmul precision policy (bf16 inputs, f32 accumulation).
    xb = x.astype(jnp.bfloat16).astype(jnp.float32)
    wmb = w_mean.astype(jnp.bfloat16).astype(jnp.float32)
    wvb = w_var.astype(jnp.bfloat16).astype(jnp.float32)
    q_m_ref = xb @ wmb + b_mean
    q_v_ref = jnp.exp(xb @ wvb + b_var) + VAR_EPS
    lat_ref = jax.nn.sigmoid(q_m_ref + jnp.sqrt(q_v_ref) * eps)
    assert jnp.allclose(q_m, q_m_ref, atol=1e-4, rtol=1e-4)
    assert jnp.allclose(q_v, q_v_ref, atol=1e-4, rtol=1e-4)
    assert jnp.allclose(latent, lat_ref, atol=1e-4, rtol=1e-4)

    # Loose sanity check against the pure-f32 module semantics.
    q_m_f32 = x @ w_mean + b_mean
    q_v_f32 = jnp.exp(x @ w_var + b_var) + VAR_EPS
    lat_f32 = jax.nn.sigmoid(q_m_f32 + jnp.sqrt(q_v_f32) * eps)
    assert jnp.allclose(q_m, q_m_f32, atol=5e-2, rtol=5e-2)
    assert jnp.allclose(q_v, q_v_f32, atol=5e-2, rtol=5e-2)
    assert jnp.allclose(latent, lat_f32, atol=5e-2, rtol=5e-2)

    print("KERNEL_OK")
</pallas_src>

<mosaic_0001>
module attributes {stable_mosaic.version = 11 : i64} {
  func.func @_linear_encoder_kernel(%arg0: i32, %arg1: memref<8x16xbf16, #tpu.memory_space<vmem>>, %arg2: memref<16x256xbf16, #tpu.memory_space<vmem>>, %arg3: memref<1x256xf32, #tpu.memory_space<vmem>>, %arg4: memref<8x128xf32, #tpu.memory_space<vmem>>, %arg5: memref<8x128xf32, #tpu.memory_space<vmem>>, %arg6: memref<8x128xf32, #tpu.memory_space<vmem>>, %arg7: memref<8x128xf32, #tpu.memory_space<vmem>>) attributes {dimension_semantics = [#tpu.dimension_semantics<parallel>], iteration_bounds = array<i64: 1>, scalar_prefetch = 0 : i64, scratch_operands = 0 : i64, tpu.core_type = #tpu.core_type<tc>, window_params = [{transform_indices = @transform_0, window_bounds = array<i64: 8, 16>}, {pipeline_mode = #tpu.pipeline_mode<synchronous>, transform_indices = @transform_1, window_bounds = array<i64: 16, 256>}, {pipeline_mode = #tpu.pipeline_mode<synchronous>, transform_indices = @transform_2, window_bounds = array<i64: 1, 256>}, {transform_indices = @transform_3, window_bounds = array<i64: 8, 128>}, {transform_indices = @transform_4, window_bounds = array<i64: 8, 128>}, {transform_indices = @transform_5, window_bounds = array<i64: 8, 128>}, {transform_indices = @transform_6, window_bounds = array<i64: 8, 128>}]} {
    %c0 = arith.constant 0 : index
    %c0_0 = arith.constant 0 : index
    %0 = vector.load %arg1[%c0, %c0_0] : memref<8x16xbf16, #tpu.memory_space<vmem>>, vector<8x16xbf16>
    %c0_1 = arith.constant 0 : index
    %c0_2 = arith.constant 0 : index
    %1 = vector.load %arg2[%c0_1, %c0_2] : memref<16x256xbf16, #tpu.memory_space<vmem>>, vector<16x256xbf16>
    %cst = arith.constant dense<0.000000e+00> : vector<8x256xf32>
    %2 = tpu.matmul %0, %1, %cst {dimension_numbers = #tpu.dot_dimension_numbers<[1], [0], [0], [1], [0, 0, 1, 1], [], []>} : vector<8x16xbf16>, vector<16x256xbf16>, vector<8x256xf32> -> vector<8x256xf32>
    %c0_3 = arith.constant 0 : index
    %c0_4 = arith.constant 0 : index
    %3 = vector.load %arg3[%c0_3, %c0_4] : memref<1x256xf32, #tpu.memory_space<vmem>>, vector<1x256xf32>
    %4 = vector.broadcast %3 : vector<1x256xf32> to vector<8x256xf32>
    %5 = arith.addf %2, %4 : vector<8x256xf32>
    %6 = vector.extract_strided_slice %5 {offsets = [0, 0], sizes = [8, 128], strides = [1, 1]} : vector<8x256xf32> to vector<8x128xf32>
    %7 = vector.extract_strided_slice %5 {offsets = [0, 128], sizes = [8, 128], strides = [1, 1]} : vector<8x256xf32> to vector<8x128xf32>
    %8 = math.exp %7 : vector<8x128xf32>
    %cst_5 = arith.constant 9.99999974E-5 : f32
    %9 = vector.broadcast %cst_5 : f32 to vector<8x128xf32>
    %10 = arith.addf %8, %9 : vector<8x128xf32>
    %11 = math.sqrt %10 : vector<8x128xf32>
    %c0_6 = arith.constant 0 : index
    %c0_7 = arith.constant 0 : index
    %12 = vector.load %arg4[%c0_6, %c0_7] : memref<8x128xf32, #tpu.memory_space<vmem>>, vector<8x128xf32>
    %13 = arith.mulf %11, %12 : vector<8x128xf32>
    %14 = arith.addf %6, %13 : vector<8x128xf32>
    %15 = arith.negf %14 : vector<8x128xf32>
    %16 = math.exp %15 : vector<8x128xf32>
    %cst_8 = arith.constant 1.000000e+00 : f32
    %17 = vector.broadcast %cst_8 : f32 to vector<8x128xf32>
    %18 = arith.addf %17, %16 : vector<8x128xf32>
    %19 = arith.divf %17, %18 : vector<8x128xf32>
    %c0_9 = arith.constant 0 : index
    %c0_10 = arith.constant 0 : index
    %20 = vector.load %arg5[%c0_9, %c0_10] : memref<8x128xf32, #tpu.memory_space<vmem>>, vector<8x128xf32>
    tpu.vector_store %arg5[%c0_9, %c0_10], %6 {strides = array<i32>} : memref<8x128xf32, #tpu.memory_space<vmem>>, vector<8x128xf32>,
    %c0_11 = arith.constant 0 : index
    %c0_12 = arith.constant 0 : index
    %21 = vector.load %arg6[%c0_11, %c0_12] : memref<8x128xf32, #tpu.memory_space<vmem>>, vector<8x128xf32>
    tpu.vector_store %arg6[%c0_11, %c0_12], %10 {strides = array<i32>} : memref<8x128xf32, #tpu.memory_space<vmem>>, vector<8x128xf32>,
    %c0_13 = arith.constant 0 : index
    %c0_14 = arith.constant 0 : index
    %22 = vector.load %arg7[%c0_13, %c0_14] : memref<8x128xf32, #tpu.memory_space<vmem>>, vector<8x128xf32>
    tpu.vector_store %arg7[%c0_13, %c0_14], %19 {strides = array<i32>} : memref<8x128xf32, #tpu.memory_space<vmem>>, vector<8x128xf32>,
    return
  }
  func.func @transform_0(%arg0: i32) -> (i32, i32) {
    %c0_i32 = arith.constant 0 : i32
    %c0_i32_0 = arith.constant 0 : i32
    return %arg0, %c0_i32 : i32, i32
  }
  func.func @transform_1(%arg0: i32) -> (i32, i32) {
    %c0_i32 = arith.constant 0 : i32
    %c0_i32_0 = arith.constant 0 : i32
    %c0_i32_1 = arith.constant 0 : i32
    return %c0_i32, %c0_i32_0 : i32, i32
  }
  func.func @transform_2(%arg0: i32) -> (i32, i32) {
    %c0_i32 = arith.constant 0 : i32
    %c0_i32_0 = arith.constant 0 : i32
    %c0_i32_1 = arith.constant 0 : i32
    return %c0_i32, %c0_i32_0 : i32, i32
  }
  func.func @transform_3(%arg0: i32) -> (i32, i32) {
    %c0_i32 = arith.constant 0 : i32
    %c0_i32_0 = arith.constant 0 : i32
    return %arg0, %c0_i32 : i32, i32
  }
  func.func @transform_4(%arg0: i32) -> (i32, i32) {
    %c0_i32 = arith.constant 0 : i32
    %c0_i32_0 = arith.constant 0 : i32
    return %arg0, %c0_i32 : i32, i32
  }
  func.func @transform_5(%arg0: i32) -> (i32, i32) {
    %c0_i32 = arith.constant 0 : i32
    %c0_i32_0 = arith.constant 0 : i32
    return %arg0, %c0_i32 : i32, i32
  }
  func.func @transform_6(%arg0: i32) -> (i32, i32) {
    %c0_i32 = arith.constant 0 : i32
    %c0_i32_0 = arith.constant 0 : i32
    return %arg0, %c0_i32 : i32, i32
  }
}

</mosaic_0001>

<bundles_post_ra>
// kernel: tpu_custom_call.1
= control target key start
LH: loop header
LB: loop body
LE: loop exit
PB: predicated region body
PF: predicated region fallthrough
CT: control target
= control target key end

     0   :  { %12 = vsyncpa [#allocation3], 0  ;;  %s441_s0 = inlined_call_operand.hbm [shape: bf16[8,16], index: 0, kind: input, shape index: {}]   ;;  %s442_s1 = inlined_call_operand.hbm [shape: bf16[16,256], index: 1, kind: input, shape index: {}]   ;;  %s443_s2 = inlined_call_operand.vmem [shape: f32[1,256], index: 2, kind: input, shape index: {}]   ;;  %s444_s3 = inlined_call_operand.vmem [shape: f32[8,128], index: 3, kind: input, shape index: {}]   ;;  %s445_s4 = inlined_call_operand.hbm [shape: f32[8,128], index: 4, kind: output, shape index: {0}]   ;;  %s446_s5 = inlined_call_operand.hbm [shape: f32[8,128], index: 5, kind: output, shape index: {1}]   ;;  %s447_s6 = inlined_call_operand.hbm [shape: f32[8,128], index: 6, kind: output, shape index: {2}]  }
   0x1   :  { %13 = vsyncpa [#allocation6], 0 }
   0x2   :  { %14 = vsyncpa [#allocation4], 0 }
   0x3   :  { %15 = vsyncpa [#allocation9], 0  ;;  %s325_s21 = smov [#allocation2]   ;;  %s326_s23 = smov [#allocation5]  }
   0x4   :  { %s22_s22 = sshll.u32 %s325_s21, 4  ;;  %s31_s24 = sshll.u32 %s326_s23, 4  ;;  %s23_s22 = int_to_ptr.vmem [resolvable:$true] %s22_s22  ;;  %s368_s24 = int_to_ptr.vmem [resolvable:$true] %s31_s24 }
   0x5   :  { %s207_s27 = scalar_lea.hbm %s441_s0, 64 }
   0x6   :  { %p208_p0 = scmp.ne.s32.totalorder %s441_s0, %s207_s27  ;;  %p211_p1 = scmp.lt.u32.totalorder %s207_s27, %s441_s0 }
   0x8   :  { %p213_p2 = pnand %p211_p1, %p208_p0 }
   0xa   :  { %216 = shalt.err (!%p213_p2)
}
   0xb   :  { %s217_s8 = scalar_lea.vmem %s23_s22, 64  ;;  %p222_p4 = scmp.lt.s32.totalorder %s23_s22, %s23_s22 }
   0xc   :  { %p218_p3 = scmp.ne.s32.totalorder %s23_s22, %s217_s8  ;;  %p223_p5 = scmp.lt.s32.totalorder %s217_s8, %s217_s8 }
   0xe   :  { %p224_p6 = por %p223_p5, %p222_p4 }
  0x10   :  { %p225_p7 = pnand %p224_p6, %p218_p3 }
  0x12   :  { %228 = shalt.err (!%p225_p7)
}
  0x13   :  { %25 = dma.hbm_to_vmem [thread:$0]  %s441_s0, 64, %s23_s22, [#allocation3]  }
  0x14   :  { %s229_s13 = scalar_lea.hbm %s442_s1, 256 }
  0x15   :  { %p230_p8 = scmp.ne.s32.totalorder %s442_s1, %s229_s13  ;;  %p233_p9 = scmp.lt.u32.totalorder %s229_s13, %s442_s1 }
  0x17   :  { %p235_p10 = pnand %p233_p9, %p230_p8 }
  0x19   :  { %238 = shalt.err (!%p235_p10)
}
  0x1a   :  { %s239_s18 = scalar_lea.vmem %s368_s24, 256  ;;  %p244_p12 = scmp.lt.s32.totalorder %s368_s24, %s368_s24 }
  0x1b   :  { %p240_p11 = scmp.ne.s32.totalorder %s368_s24, %s239_s18  ;;  %p245_p13 = scmp.lt.s32.totalorder %s239_s18, %s239_s18 }
  0x1d   :  { %p246_p0 = por %p245_p13, %p244_p12 }
  0x1f   :  { %p247_p1 = pnand %p246_p0, %p240_p11 }
  0x21   :  { %250 = shalt.err (!%p247_p1)
}
  0x22   :  { %s327_s0 = smov 128   ;;  %s328_s19 = smov 8  }
  0x23   :  { %37 = dma.hbm_to_vmem [thread:$0]  %s442_s1, 256, %s368_s24, [#allocation6], %s327_s0, %s327_s0, %s328_s19  }
  0x24   :  { %317 = dma.done.wait [#allocation3], 64  }
  0x25   :  { %318 = vsyncadd [#allocation3], 4294967232 }
  0x26   :  { %319 = dma.done.wait [#allocation6], 256  }
  0x27   :  { %320 = vsyncadd [#allocation6], 4294967040  ;;  %v329_v0 = vmov 0   ;;  %v196_v1 = vld [vmem:[#allocation5 + $0x4] ss:$8 sps:$4 sm:$0xff]   ;;  %vm74_vm0 = vcmask 130048   ;;  %v54_v4 = vlaneseq }
  0x28   :  { %110 = vmatprep.mubr.bf16.mxu0 %v329_v0  ;;  %v198_v2 = vld [vmem:[#allocation5] ss:$8 sps:$4 sm:$0xff]   ;;  %78 = vmatprep.subr.bf16.mxu0 %v196_v1  ;;  %v49_v3 = vld [vmem:[#allocation2] sm:$0xf]  ;;  %v52_v7 = vld [vmem:[%s443_s2] sm:$0x3] }
  0x29   :  { %79 = vmatpush1.bf16.msra.mxu0 %v198_v2  ;;  %v55_v5 = vshrl.u32 %v54_v4, 7  ;;  %s330_s1 = smov [#allocation7]  }
  0x2a   :  { %s147_s24 = sshll.u32 %s330_s1, 4  ;;  %s148_s24 = int_to_ptr.vmem [resolvable:$true] %s147_s24 }
  0x2b   :  { %v56_v6 = vsub.s32 0, %v55_v5  ;;  %v60_v8 = vsub.s32 1, %v55_v5  ;;  %s251_s25 = scalar_lea.vmem %s148_s24, 128  ;;  %p256_p3 = scmp.lt.s32.totalorder %s148_s24, %s148_s24 }
  0x2c   :  { %186 = vmatmul.mubr.msk.bf16.vlgmr.msra.gmra.mrb[0].mxu0 %vm74_vm0, %v49_v3  ;;  %p252_p2 = scmp.ne.s32.totalorder %s148_s24, %s251_s25  ;;  %p257_p4 = scmp.lt.s32.totalorder %s251_s25, %s251_s25 }
  0x2d   :  { %v57_v9 = vrot.slane %v52_v7, %v56_v6  ;;  %v61_v10 = vrot.slane %v52_v7, %v60_v8 }
  0x2e   :  { %p258_p5 = por %p257_p4, %p256_p3 }
  0x30   :  { %p259_p6 = pnand %p258_p5, %p252_p2 }
  0xff   :  { %v112_v11 = vpop.f32.mrb[0].mxu0 }
 0x100   :  { %v113_v12 = vadd.f32 %v112_v11, %v57_v9  ;;  %v114_v13 = vpop.f32.mrb[1].mxu0 }
 0x101   :  { %v115_v14 = vadd.f32 %v114_v13, %v61_v10  ;;  %v116_v15 = vpop.f32.mrb[2].mxu0 }
 0x102   :  { %138 = vst [vmem:[#allocation7] sm:$0xff] %v113_v12  ;;  %v117_v16 = vpop.f32.mrb[3].mxu0 }
 0x103   :  { %v119_v17 = vmul.f32 1.442695, %v115_v14 }
 0x104   :  { %262 = shalt.err (!%p259_p6)
}
 0x105   :  { %s263_s27 = scalar_lea.hbm %s445_s4, 128 }
 0x106   :  { %p264_p7 = scmp.ne.s32.totalorder %s445_s4, %s263_s27  ;;  %p267_p8 = scmp.lt.u32.totalorder %s263_s27, %s445_s4 }
 0x108   :  { %p269_p9 = pnand %p267_p8, %p264_p7 }
 0x10a   :  { %272 = shalt.err (!%p269_p9)
}
 0x10b   :  { %150 = dma.vmem_to_hbm [thread:$0]  %s148_s24, 128, %s445_s4, [#allocation4]   ;;  %199 = vpow2.f32 %v119_v17 }
 0x10c   :  { %s331_s10 = smov [#allocation8]  }
 0x10d   :  { %s157_s11 = sshll.u32 %s331_s10, 4  ;;  %s158_s11 = int_to_ptr.vmem [resolvable:$true] %s157_s11 }
 0x10e   :  { %s273_s12 = scalar_lea.vmem %s158_s11, 128  ;;  %p278_p11 = scmp.lt.s32.totalorder %s158_s11, %s158_s11 }
 0x10f   :  { %p274_p10 = scmp.ne.s32.totalorder %s158_s11, %s273_s12  ;;  %p279_p12 = scmp.lt.s32.totalorder %s273_s12, %s273_s12 }
 0x111   :  { %p280_p13 = por %p279_p12, %p278_p11 }
 0x113   :  { %p281_p0 = pnand %p280_p13, %p274_p10 }
 0x115   :  { %v200_v18 = vpop.eup %199 }
 0x116   :  { %v121_v19 = vadd.f32 0.0001, %v200_v18 }
 0x118   :  { %201 = vrsqrt.f32 %v121_v19  ;;  %139 = vst [vmem:[#allocation8] sm:$0xff] %v121_v19 }
 0x119   :  { %284 = shalt.err (!%p281_p0)
}
 0x11a   :  { %s285_s15 = scalar_lea.hbm %s446_s5, 128 }
 0x11b   :  { %p286_p1 = scmp.ne.s32.totalorder %s446_s5, %s285_s15  ;;  %p289_p2 = scmp.lt.u32.totalorder %s285_s15, %s446_s5 }
 0x11d   :  { %p291_p3 = pnand %p289_p2, %p286_p1 }
 0x11f   :  { %294 = shalt.err (!%p291_p3)
}
 0x120   :  { %160 = dma.vmem_to_hbm [thread:$0]  %s158_s11, 128, %s446_s5, [#allocation9]   ;;  %vm124_vm1 = vcmp.eq.f32.partialorder %v121_v19, inf  ;;  %v127_v22 = vand.u32 2147483648, %v121_v19  ;;  %v129_v23 = vld [vmem:[%s444_s3] sm:$0xff]  ;;  %vm126_vm2 = vcmp.eq.f32.partialorder %v121_v19, 0.0 }
 0x121   :  { %s332_s22 = smov [#allocation10]  }
 0x122   :  { %v202_v20 = vpop.eup %201  ;;  %s167_s5 = sshll.u32 %s332_s22, 4  ;;  %s168_s5 = int_to_ptr.vmem [resolvable:$true] %s167_s5 }
 0x123   :  { %v123_v21 = vmul.f32 %v202_v20, %v121_v19  ;;  %s295_s23 = scalar_lea.vmem %s168_s5, 128  ;;  %p300_p5 = scmp.lt.s32.totalorder %s168_s5, %s168_s5 }
 0x124   :  { %p296_p4 = scmp.ne.s32.totalorder %s168_s5, %s295_s23  ;;  %p301_p6 = scmp.lt.s32.totalorder %s295_s23, %s295_s23 }
 0x125   :  { %v125_v24 = vsel %vm124_vm1, %v121_v19, %v123_v21 }
 0x126   :  { %v128_v25 = vsel %vm126_vm2, %v127_v22, %v125_v24  ;;  %p302_p7 = por %p301_p6, %p300_p5 }
 0x127   :  { %v130_v26 = vmul.f32 %v129_v23, %v128_v25 }
 0x128   :  { %p303_p8 = pnand %p302_p7, %p296_p4 }
 0x129   :  { %v131_v27 = vadd.f32 %v130_v26, %v113_v12 }
 0x12b   :  { %v187_v28 = vmul.f32 -1.442695, %v131_v27 }
 0x12d   :  { %203 = vpow2.f32 %v187_v28 }
 0x137   :  { %v204_v29 = vpop.eup %203 }
 0x138   :  { %v135_v30 = vadd.f32 1.0, %v204_v29 }
 0x13a   :  { %205 = vrcp.f32 %v135_v30 }
 0x144   :  { %v206_v31 = vpop.eup %205 }
 0x145   :  { %140 = vst [vmem:[#allocation10] sm:$0xff] %v206_v31 }
 0x146   :  { %306 = shalt.err (!%p303_p8)
}
 0x147   :  { %s307_s24 = scalar_lea.hbm %s447_s6, 128 }
 0x148   :  { %p308_p9 = scmp.ne.s32.totalorder %s447_s6, %s307_s24  ;;  %p311_p10 = scmp.lt.u32.totalorder %s307_s24, %s447_s6 }
 0x14a   :  { %p313_p11 = pnand %p311_p10, %p308_p9 }
 0x14c   :  { %316 = shalt.err (!%p313_p11)
}
 0x14d   :  { %170 = dma.vmem_to_hbm [thread:$0]  %s168_s5, 128, %s447_s6, [#allocation9]  }
 0x14e   :  { %321 = dma.done.wait [#allocation4], 128  }
 0x14f   :  { %322 = vsyncadd [#allocation4], 4294967168 }
 0x150   :  { %323 = dma.done.wait [#allocation9], 256  }
 0x151   :  { %324 = vsyncadd [#allocation9], 4294967040 }
 0x152   :  { %180 = vsyncpa [#allocation3], 1 }
 0x153   :  { %181 = vsyncpa [#allocation6], 1 }
 0x154   :  { %182 = vsyncpa [#allocation4], 1 }
 0x155   :  { %183 = vsyncpa [#allocation9], 1 }

</bundles_post_ra>
